<compile_context>
chip_gen: v5e
topology: v5e:2x2
jax: 0.10.0
libtpu: 0.0.40
codegen_flags: <defaults>
</compile_context>

<pallas_src>
import functools

import jax
import jax.numpy as jnp
from jax.experimental import pallas as pl
from jax.experimental.pallas import tpu as pltpu

_NEG_BIG = -1.0e30  # finite "-inf" for padded class columns


def _tanh_compute_dtype():
    """bf16 VPU/EUP path exists on v6e / v7x; v5e (and older) need f32."""
    try:
        kind = jax.devices()[0].device_kind.lower()
    except Exception:  # pragma: no cover - defensive; default to the safe path
        return jnp.float32
    if any(tag in kind for tag in ("v6", "v7", "trillium")):
        return jnp.bfloat16
    return jnp.float32


def _choose_row_tile(m):
    """Row tile: multiple of 16 (bf16 sublane packing), targeting 1024 rows,
    capped so the parallel grid has >= 2 tiles whenever the problem allows it
    (keeps both v7x TensorCores busy)."""
    m16 = max(16, ((m + 15) // 16) * 16)
    if m16 <= 16:
        return 16
    if m16 >= 2048:
        return 1024
    # two tiles: ceil(m16 / 2) rounded up to a multiple of 16
    return ((m16 // 2 + 15) // 16) * 16


def _fused_classifier_kernel(x_ref, w_ref, b_ref, logits_ref, preds_ref, *,
                             compute_dtype):
    """tanh epilogue + classifier matmul + bias + stable softmax.

    x_ref:      [TM, H]   bf16 masked pre-activation (mask already folded in)
    w_ref:      [H, CP]   bf16 classifier weight, class axis padded to CP lanes
    b_ref:      [1, CP]   f32 bias; padded columns hold -1e30 to mask them
    logits_ref: [TM, C]   f32 (only the real C class columns are written)
    preds_ref:  [TM, C]   f32
    """
    c = logits_ref.shape[-1]

    # Fused encoder-stub epilogue.  The 0/1 attention mask was folded into the
    # pre-activation upstream (tanh(m*x) = m*tanh(x)).  tanh runs in bf16 on
    # v6e/v7x, f32 on v5e; the MXU is always fed bf16 with f32 accumulation.
    h = jnp.tanh(x_ref[...].astype(compute_dtype)).astype(jnp.bfloat16)
    logits = (
        jnp.dot(h, w_ref[...], preferred_element_type=jnp.float32)
        + b_ref[...]
    )

    # Numerically stable softmax in f32 over the padded class axis; padded
    # columns sit at -1e30, so exp underflows to exactly 0 and they never
    # perturb max/sum.
    m = jnp.max(logits, axis=-1, keepdims=True)
    e = jnp.exp(logits - m)
    denom = jnp.sum(e, axis=-1, keepdims=True)
    p = e * pl.reciprocal(denom, approx=True)

    # Store only the real C class columns (lane-masked stores): ~10x fewer HBM
    # write bytes than a padded 128-wide output, and no wrapper slice pass.
    logits_ref[...] = logits[:, :c]
    preds_ref[...] = p[:, :c]


@functools.partial(jax.jit, static_argnames=("num_classes", "compute_dtype"))
def classifier_softmax(pre_act_flat, weight_t, bias, *, num_classes,
                       compute_dtype):
    """pre_act_flat: [M, H] bf16 (mask folded in), weight_t: [H, C], bias: [C].

    Returns (logits, predictions), each [M, num_classes] in f32.
    """
    M, H = pre_act_flat.shape
    C = num_classes
    CP = ((C + 127) // 128) * 128          # lane-dense padded class axis (MXU feed)
    TM = _choose_row_tile(M)
    n_tiles = pl.cdiv(M, TM)
    M_pad = n_tiles * TM

    # Pad rows with zeros: tanh(0)=0 -> logits = bias -> finite softmax; padded
    # rows are sliced away below, so no masking is needed in-kernel.
    if M_pad != M:
        pre_act_flat = jnp.pad(pre_act_flat, ((0, M_pad - M), (0, 0)))

    # Pad classifier params to CP lanes; padded bias columns get -1e30.
    w_pad = jnp.zeros((H, CP), jnp.bfloat16).at[:, :C].set(
        weight_t.astype(jnp.bfloat16))
    b_pad = jnp.full((1, CP), _NEG_BIG, jnp.float32).at[:, :C].set(
        bias.astype(jnp.float32))

    kernel = functools.partial(_fused_classifier_kernel,
                               compute_dtype=compute_dtype)

    out_shapes = (
        jax.ShapeDtypeStruct((M_pad, C), jnp.float32),
        jax.ShapeDtypeStruct((M_pad, C), jnp.float32),
    )
    logits, preds = pl.pallas_call(
        kernel,
        out_shape=out_shapes,
        grid=(n_tiles,),
        in_specs=[
            pl.BlockSpec((TM, H), lambda i: (i, 0)),    # hidden rows: tiled
            pl.BlockSpec((H, CP), lambda i: (0, 0)),    # weight: resident
            pl.BlockSpec((1, CP), lambda i: (0, 0)),    # bias:   resident
        ],
        out_specs=(
            pl.BlockSpec((TM, C), lambda i: (i, 0)),    # C-wide (unpadded) stores
            pl.BlockSpec((TM, C), lambda i: (i, 0)),
        ),
        compiler_params=pltpu.CompilerParams(
            dimension_semantics=("parallel",),
            vmem_limit_bytes=48 * 1024 * 1024,
        ),
    )(pre_act_flat, w_pad, b_pad)

    if M_pad != M:
        logits = logits[:M]
        preds = preds[:M]
    return logits, preds


def pretrained_encoder_stub(input_values, attention_mask, wp, bp):
    """Deterministic stand-in for the pretrained encoder (pre-activation only;
    its tanh epilogue is fused into the classifier kernel)."""
    # TODO(synk): the real pretrained transformer encoder is an external black
    # box with no clean Pallas equivalent; stubbed with a per-frame projection.
    pre = jnp.einsum("bsf,fh->bsh", input_values, wp) + bp
    # Fold the 0/1 attention mask here (tanh(m*x) = m*tanh(x) for m in {0,1});
    # it fuses into the einsum epilogue, and the bf16 downcast fuses too, so no
    # separate [M, H] HBM pass is added by the wrapper.
    pre = pre * attention_mask[..., None].astype(pre.dtype)
    return pre.astype(jnp.bfloat16)


def chord_classifier_forward(input_values, attention_mask, params, *,
                             compute_dtype=jnp.float32):
    wp, bp, w_cls, b_cls = params
    B = input_values.shape[0]
    C = w_cls.shape[0]

    # NOTE: the reference's torch.stack(outputs.hidden_states).squeeze() is
    # never consumed in forward(); dropped here (dead-code cleanup).

    pre_bf = pretrained_encoder_stub(input_values, attention_mask, wp, bp)   # [B,S,H] bf16
    H = pre_bf.shape[-1]
    pre_flat = pre_bf.reshape(-1, H)                                         # [B*S, H]

    # PyTorch Linear stores weight as [C, H]; kernel expects [H, C].
    logits_flat, preds_flat = classifier_softmax(
        pre_flat, w_cls.T, b_cls, num_classes=C, compute_dtype=compute_dtype)

    logits = logits_flat.reshape(B, -1, C)
    predictions = preds_flat.reshape(B, -1, C)
    return {"logits": logits, "predictions": predictions}


if __name__ == "__main__":
    # Small, module-consistent shapes.
    B, S, F, H, C = 2, 8, 24, 32, 12   # batch, seq, feat, hidden_size, num_classes

    key = jax.random.PRNGKey(0)
    k_iv, k_wp, k_bp, k_w, k_b = jax.random.split(key, 5)

    input_values = jax.random.normal(k_iv, (B, S, F), dtype=jnp.float32)
    attention_mask = jnp.ones((B, S), dtype=jnp.int32)

    wp = jax.random.normal(k_wp, (F, H), dtype=jnp.float32) * 0.1
    bp = jax.random.normal(k_bp, (H,), dtype=jnp.float32) * 0.1
    w_cls = jax.random.normal(k_w, (C, H), dtype=jnp.float32) * 0.1   # PyTorch [C, H]
    b_cls = jax.random.normal(k_b, (C,), dtype=jnp.float32) * 0.1

    params = (wp, bp, w_cls, b_cls)
    compute_dtype = _tanh_compute_dtype()

    out = chord_classifier_forward(input_values, attention_mask, params,
                                   compute_dtype=compute_dtype)
    jax.block_until_ready(out)

    # Pure-JAX reference following the same quantization path as the kernel.
    pre = jnp.einsum("bsf,fh->bsh", input_values, wp) + bp
    pre = pre * attention_mask[..., None].astype(jnp.float32)
    pre_bf = pre.astype(jnp.bfloat16)
    h_ref = jnp.tanh(pre_bf.astype(compute_dtype)).astype(jnp.bfloat16)
    h_ref = h_ref.astype(jnp.float32)
    w_bf = w_cls.T.astype(jnp.bfloat16).astype(jnp.float32)
    ref_logits = jnp.einsum("bsh,hc->bsc", h_ref, w_bf) + b_cls
    ref_preds = jax.nn.softmax(ref_logits, axis=-1)

    assert out["logits"].shape == (B, S, C)
    assert out["predictions"].shape == (B, S, C)
    assert jnp.allclose(out["logits"], ref_logits, atol=2e-3, rtol=2e-3)
    assert jnp.allclose(out["predictions"], ref_preds, atol=2e-3, rtol=2e-2)

    print("KERNEL_OK")
</pallas_src>

<mosaic_0001>
module attributes {stable_mosaic.version = 11 : i64} {
  func.func @_fused_classifier_kernel(%arg0: i32, %arg1: memref<16x32xbf16, #tpu.memory_space<vmem>>, %arg2: memref<32x128xbf16, #tpu.memory_space<vmem>>, %arg3: memref<1x128xf32, #tpu.memory_space<vmem>>, %arg4: memref<16x12xf32, #tpu.memory_space<vmem>>, %arg5: memref<16x12xf32, #tpu.memory_space<vmem>>) attributes {dimension_semantics = [#tpu.dimension_semantics<parallel>], iteration_bounds = array<i64: 1>, scalar_prefetch = 0 : i64, scratch_operands = 0 : i64, tpu.core_type = #tpu.core_type<tc>, window_params = [{transform_indices = @transform_0, window_bounds = array<i64: 16, 32>}, {pipeline_mode = #tpu.pipeline_mode<synchronous>, transform_indices = @transform_1, window_bounds = array<i64: 32, 128>}, {pipeline_mode = #tpu.pipeline_mode<synchronous>, transform_indices = @transform_2, window_bounds = array<i64: 1, 128>}, {transform_indices = @transform_3, window_bounds = array<i64: 16, 12>}, {transform_indices = @transform_4, window_bounds = array<i64: 16, 12>}]} {
    %c0 = arith.constant 0 : index
    %c0_0 = arith.constant 0 : index
    %0 = vector.load %arg1[%c0, %c0_0] : memref<16x32xbf16, #tpu.memory_space<vmem>>, vector<16x32xbf16>
    %1 = arith.extf %0 : vector<16x32xbf16> to vector<16x32xf32>
    %2 = math.tanh %1 : vector<16x32xf32>
    %3 = arith.truncf %2 : vector<16x32xf32> to vector<16x32xbf16>
    %c0_1 = arith.constant 0 : index
    %c0_2 = arith.constant 0 : index
    %4 = vector.load %arg2[%c0_1, %c0_2] : memref<32x128xbf16, #tpu.memory_space<vmem>>, vector<32x128xbf16>
    %cst = arith.constant dense<0.000000e+00> : vector<16x128xf32>
    %5 = tpu.matmul %3, %4, %cst {dimension_numbers = #tpu.dot_dimension_numbers<[1], [0], [0], [1], [0, 0, 1, 1], [], []>} : vector<16x32xbf16>, vector<32x128xbf16>, vector<16x128xf32> -> vector<16x128xf32>
    %c0_3 = arith.constant 0 : index
    %c0_4 = arith.constant 0 : index
    %6 = vector.load %arg3[%c0_3, %c0_4] : memref<1x128xf32, #tpu.memory_space<vmem>>, vector<1x128xf32>
    %7 = vector.broadcast %6 : vector<1x128xf32> to vector<16x128xf32>
    %8 = arith.addf %5, %7 : vector<16x128xf32>
    %cst_5 = arith.constant dense<0xFF800000> : vector<16xf32>
    %9 = vector.multi_reduction <maximumf>, %8, %cst_5 [1] : vector<16x128xf32> to vector<16xf32>
    %10 = vector.shape_cast %9 : vector<16xf32> to vector<16x1xf32>
    %11 = vector.broadcast %10 : vector<16x1xf32> to vector<16x128xf32>
    %12 = arith.subf %8, %11 : vector<16x128xf32>
    %13 = math.exp %12 : vector<16x128xf32>
    %cst_6 = arith.constant dense<0.000000e+00> : vector<16xf32>
    %14 = vector.multi_reduction <add>, %13, %cst_6 [1] : vector<16x128xf32> to vector<16xf32>
    %15 = vector.shape_cast %14 : vector<16xf32> to vector<16x1xf32>
    %16 = tpu.reciprocal %15 {approx = true} : vector<16x1xf32> -> vector<16x1xf32>
    %17 = vector.broadcast %16 : vector<16x1xf32> to vector<16x128xf32>
    %18 = arith.mulf %13, %17 : vector<16x128xf32>
    %19 = vector.extract_strided_slice %8 {offsets = [0, 0], sizes = [16, 12], strides = [1, 1]} : vector<16x128xf32> to vector<16x12xf32>
    %c0_7 = arith.constant 0 : index
    %c0_8 = arith.constant 0 : index
    %20 = vector.load %arg4[%c0_7, %c0_8] : memref<16x12xf32, #tpu.memory_space<vmem>>, vector<16x12xf32>
    tpu.vector_store %arg4[%c0_7, %c0_8], %19 {strides = array<i32>} : memref<16x12xf32, #tpu.memory_space<vmem>>, vector<16x12xf32>,
    %21 = vector.extract_strided_slice %18 {offsets = [0, 0], sizes = [16, 12], strides = [1, 1]} : vector<16x128xf32> to vector<16x12xf32>
    %c0_9 = arith.constant 0 : index
    %c0_10 = arith.constant 0 : index
    %22 = vector.load %arg5[%c0_9, %c0_10] : memref<16x12xf32, #tpu.memory_space<vmem>>, vector<16x12xf32>
    tpu.vector_store %arg5[%c0_9, %c0_10], %21 {strides = array<i32>} : memref<16x12xf32, #tpu.memory_space<vmem>>, vector<16x12xf32>,
    return
  }
  func.func @transform_0(%arg0: i32) -> (i32, i32) {
    %c0_i32 = arith.constant 0 : i32
    %c0_i32_0 = arith.constant 0 : i32
    return %arg0, %c0_i32 : i32, i32
  }
  func.func @transform_1(%arg0: i32) -> (i32, i32) {
    %c0_i32 = arith.constant 0 : i32
    %c0_i32_0 = arith.constant 0 : i32
    %c0_i32_1 = arith.constant 0 : i32
    return %c0_i32, %c0_i32_0 : i32, i32
  }
  func.func @transform_2(%arg0: i32) -> (i32, i32) {
    %c0_i32 = arith.constant 0 : i32
    %c0_i32_0 = arith.constant 0 : i32
    %c0_i32_1 = arith.constant 0 : i32
    return %c0_i32, %c0_i32_0 : i32, i32
  }
  func.func @transform_3(%arg0: i32) -> (i32, i32) {
    %c0_i32 = arith.constant 0 : i32
    %c0_i32_0 = arith.constant 0 : i32
    return %arg0, %c0_i32 : i32, i32
  }
  func.func @transform_4(%arg0: i32) -> (i32, i32) {
    %c0_i32 = arith.constant 0 : i32
    %c0_i32_0 = arith.constant 0 : i32
    return %arg0, %c0_i32 : i32, i32
  }
}

</mosaic_0001>

<bundles_post_ra>
// kernel: classifier_softmax.1
= control target key start
LH: loop header
LB: loop body
LE: loop exit
PB: predicated region body
PF: predicated region fallthrough
CT: control target
= control target key end

     0   :  { %10 = vsyncpa [#allocation3], 0  ;;  %s258_s0 = inlined_call_operand.vmem [shape: bf16[16,32], index: 0, kind: input, shape index: {}]   ;;  %s259_s1 = inlined_call_operand.vmem [shape: bf16[32,128], index: 1, kind: input, shape index: {}]   ;;  %s260_s2 = inlined_call_operand.vmem [shape: f32[1,128], index: 2, kind: input, shape index: {}]   ;;  %s261_s3 = inlined_call_operand.hbm [shape: f32[16,12], index: 3, kind: output, shape index: {0}]   ;;  %s262_s4 = inlined_call_operand.hbm [shape: f32[16,12], index: 4, kind: output, shape index: {1}]  }
   0x1   :  { %v133_v0 = vld [vmem:[%s259_s1 + $0x8] sm:$0xff]  ;;  %v135_v1 = vld [vmem:[%s258_s0] sm:$0xff]  }
   0x2   :  { %v136_v2 = vunpack.c.l.bf16 %v135_v1  ;;  %v137_v3 = vunpack.c.h.bf16 %v135_v1 }
   0x3   :  { %11 = vsyncpa [#allocation5], 0  ;;  %56 = vmatpush.bf16.msra.mxu0 %v133_v0  ;;  %v132_v4 = vld [vmem:[%s259_s1] sm:$0xff]  ;;  %vm46_vm0 = vcmask 261120   ;;  %vm82_vm1 = vcmask 97280   ;;  %s207_s0 = smov [#allocation2]  }
   0x4   :  { %143 = vtanh.f32 %v136_v2  ;;  %v142_v8 = vld [vmem:[%s260_s2] ss:$0 sm:$0xff]  ;;  %s91_s1 = sshll.u32 %s207_s0, 4  ;;  %s93_s24 = sshll.u32 %s261_s3, 4  ;;  %s92_s1 = int_to_ptr.vmem [resolvable:$true] %s91_s1  ;;  %s94_s24 = int_to_ptr.hbm [resolvable:$true] %s93_s24 }
   0x5   :  { %145 = vtanh.f32 %v137_v3  ;;  %s208_s25 = smov 128   ;;  %s209_s26 = smov 8  }
   0x6   :  { %s210_s27 = smov [#allocation4]   ;;  %s106_s3 = sshll.u32 %s262_s4, 4  ;;  %s107_s3 = int_to_ptr.hbm [resolvable:$true] %s106_s3 }
   0x7   :  { %57 = vmatpush.bf16.msra.mxu0 %v132_v4  ;;  %s104_s28 = sshll.u32 %s210_s27, 4  ;;  %s105_s28 = int_to_ptr.vmem [resolvable:$true] %s104_s28 }
   0xa   :  { %v144_v5 = vpop.eup %143 }
   0xb   :  { %v146_v6 = vpop.eup %145 }
   0xc   :  { %v25_v7 = vpack.c.bf16 %v146_v6, %v144_v5 }
   0xe   :  { %131 = vmatmul.msk.bf16.vlgmr.msra.gmra.mxu0 %vm46_vm0, %v25_v7 }
  0x8b   :  { %v59_v9 = vpop.f32.mrf.mxu0 }
  0x8c   :  { %v60_v10 = vadd.f32 %v142_v8, %v59_v9 }
  0x8e   :  { %83 = vst.msk [vmem:[#allocation2] sm:$0xff] %vm82_vm1, %v60_v10  ;;  %64 = vmax.xlane.f32.xlu0 %v60_v10 }
  0x93   :  { %v61_v11 = vpop.f32.mrf.mxu0 }
  0x94   :  { %v62_v12 = vadd.f32 %v142_v8, %v61_v11 }
  0x96   :  { %84 = vst.msk [vmem:[#allocation2 + $0x8] sm:$0xff] %vm82_vm1, %v62_v12  ;;  %66 = vmax.xlane.f32.xlu0 %v62_v12 }
  0x97   :  { %99 = dma.vmem_to_hbm [thread:$0]  %s92_s1, 256, %s94_s24, [#allocation3], %s208_s25, %s208_s25, %s209_s26  }
 0x101   :  { %v65_v13 = vpop.xlane.xlu0 %64 }
 0x102   :  { %v68_v14 = vsub.f32 %v60_v10, %v65_v13 }
 0x104   :  { %v70_v15 = vmul.f32 1.442695, %v68_v14 }
 0x106   :  { %147 = vpow2.f32 %v70_v15 }
 0x109   :  { %v67_v16 = vpop.xlane.xlu0 %66 }
 0x10a   :  { %v69_v17 = vsub.f32 %v62_v12, %v67_v16 }
 0x10c   :  { %v148_v18 = vpop.eup %147  ;;  %v72_v19 = vmul.f32 1.442695, %v69_v17 }
 0x10d   :  { %74 = vadd.xlane.f32.xlu1 %v148_v18 }
 0x10e   :  { %149 = vpow2.f32 %v72_v19 }
 0x114   :  { %v150_v20 = vpop.eup %149 }
 0x115   :  { %76 = vadd.xlane.f32.xlu1 %v150_v20 }
 0x180   :  { %v75_v21 = vpop.xlane.xlu1 %74 }
 0x181   :  { %151 = vrcp.f32 %v75_v21 }
 0x187   :  { %v152_v22 = vpop.eup %151 }
 0x188   :  { %v80_v23 = vmul.f32 %v152_v22, %v148_v18  ;;  %v77_v24 = vpop.xlane.xlu1 %76 }
 0x189   :  { %153 = vrcp.f32 %v77_v24 }
 0x18a   :  { %85 = vst.msk [vmem:[#allocation4] sm:$0xff] %vm82_vm1, %v80_v23 }
 0x18f   :  { %v154_v25 = vpop.eup %153 }
 0x190   :  { %v81_v26 = vmul.f32 %v154_v25, %v150_v20 }
 0x192   :  { %86 = vst.msk [vmem:[#allocation4 + $0x8] sm:$0xff] %vm82_vm1, %v81_v26 }
 0x193   :  { %112 = dma.vmem_to_hbm [thread:$0]  %s105_s28, 256, %s107_s3, [#allocation5], %s208_s25, %s208_s25, %s209_s26  }
 0x194   :  { %203 = dma.done.wait [#allocation3], 256  }
 0x195   :  { %204 = vsyncadd [#allocation3], 4294967040 }
 0x196   :  { %205 = dma.done.wait [#allocation5], 256  }
 0x197   :  { %206 = vsyncadd [#allocation5], 4294967040 }
 0x198   :  { %121 = vsyncpa [#allocation3], 1 }
 0x199   :  { %122 = vsyncpa [#allocation5], 1 }

</bundles_post_ra>
